<compile_context>
chip_gen: v7x
topology: tpu7x:2x2x1
jax: 0.10.0
libtpu: 0.0.40
codegen_flags: <defaults>
</compile_context>

<pallas_src>
import jax
import jax.numpy as jnp
from jax import lax
from jax.experimental import pallas as pl
from jax.experimental.pallas import tpu as pltpu


def _conv3x3_im2col_kernel(x_ref, w_ref, b_ref, o_ref, pad_ref, col_ref):
    # x_ref  : (1, H, W, D)     bf16 activation tile (one batch element)
    # w_ref  : (9*D, TN)        bf16 weight tile (rows: tap-major, then Cin)
    # b_ref  : (1, TN)          f32 bias tile
    # o_ref  : (1, H, W, TN)    output tile
    # pad_ref: (H+2, W+2, D)    f32 zero-padded halo scratch
    # col_ref: (H*W, 9*D)       bf16 im2col patch matrix scratch
    H, W, TN = o_ref.shape[1], o_ref.shape[2], o_ref.shape[3]
    D = x_ref.shape[3]

    # Build halo + im2col once per batch element; reused across all Dout tiles
    # (n is the innermost grid axis, so n == 0 marks a new batch element).
    @pl.when(pl.program_id(1) == 0)
    def _build_patches():
        pad_ref[...] = jnp.zeros_like(pad_ref)
        pad_ref[1:H + 1, 1:W + 1, :] = x_ref[0].astype(pad_ref.dtype)
        taps = []
        for k in range(9):
            dh, dw = k // 3, k % 3
            taps.append(pad_ref[dh:dh + H, dw:dw + W, :]
                        .reshape(H * W, D).astype(col_ref.dtype))
        col_ref[...] = jnp.concatenate(taps, axis=-1)

    # Single fused K = 9*D matmul on the MXU, f32 accumulation.
    acc = jnp.dot(col_ref[...], w_ref[...], preferred_element_type=jnp.float32)
    acc = acc + b_ref[...]
    o_ref[...] = acc.reshape(1, H, W, TN).astype(o_ref.dtype)


def _pick_tile_n(dout):
    # Lane/MXU-aligned output-channel tile; fall back to full width if small.
    for tn in (512, 384, 256, 128):
        if dout % tn == 0:
            return tn
    return dout


def _vmem_bytes_estimate(H, W, D, tn, out_itemsize):
    db = 2  # pipeline double-buffering of the spec'd operands
    x_t = H * W * D * 2 * db
    w_t = 9 * D * tn * 2 * db
    b_t = tn * 4 * db
    o_t = H * W * tn * out_itemsize * db
    pad_s = (H + 2) * (W + 2) * D * 4
    col_s = H * W * 9 * D * 2
    return x_t + w_t + b_t + o_t + pad_s + col_s


def conv3x3_pallas(x_nhwc, w_flat, bias, out_dtype):
    """3x3 SAME conv.  x_nhwc: (B,H,W,D) bf16, w_flat: (9*D, Dout) bf16,
    bias: (Dout,) f32  ->  (B, H, W, Dout) in out_dtype."""
    B, H, W, D = x_nhwc.shape
    Dout = w_flat.shape[-1]
    tn = _pick_tile_n(Dout)
    nt = Dout // tn
    bias2d = bias.reshape(1, Dout).astype(jnp.float32)

    cp_kwargs = dict(dimension_semantics=("parallel", "arbitrary"))
    est = _vmem_bytes_estimate(H, W, D, tn, jnp.dtype(out_dtype).itemsize)
    if est > 24 * 1024 * 1024:
        # Raise the 32 MiB scoped default only when tiles get big; cap under
        # v7x's 64 MiB physical VMEM.
        cp_kwargs["vmem_limit_bytes"] = min(int(est * 3 // 2), 60 * 1024 * 1024)

    return pl.pallas_call(
        _conv3x3_im2col_kernel,
        out_shape=jax.ShapeDtypeStruct((B, H, W, Dout), out_dtype),
        grid_spec=pltpu.PrefetchScalarGridSpec(
            num_scalar_prefetch=0,
            grid=(B, nt),
            in_specs=[
                pl.BlockSpec((1, H, W, D), lambda b, n: (b, 0, 0, 0)),
                pl.BlockSpec((9 * D, tn), lambda b, n: (0, n)),
                pl.BlockSpec((1, tn), lambda b, n: (0, n)),
            ],
            out_specs=pl.BlockSpec((1, H, W, tn), lambda b, n: (b, 0, 0, n)),
            scratch_shapes=[
                pltpu.VMEM((H + 2, W + 2, D), jnp.float32),
                pltpu.VMEM((H * W, 9 * D), jnp.bfloat16),
            ],
        ),
        compiler_params=pltpu.CompilerParams(**cp_kwargs),
    )(x_nhwc, w_flat, bias2d)


def decoder_upsample_block(x, w_hwio, bias, upscale_factor):
    """Forward pass of DecoderUpsampleBlock.

    x      : (B, 1+N, D)        token sequence with leading cls token
    w_hwio : (3, 3, D, D*r^2)   conv weight, HWIO, PyTorch output-channel
                                order co = d*r^2 + i*r + j
    bias   : (D*r^2,)
    returns: (B, 1 + N*r^2, D)
    """
    r = upscale_factor
    cls_token = x[:, :1, :]
    x_ = x[:, 1:, :]
    B, N, D = x_.shape
    H = W = int(round(N ** 0.5))
    assert H * W == N, f"token count {N} is not a perfect square"
    Dout = D * r * r

    # tokens -> NHWC image, bf16 on the way into the kernel (f32 accumulation).
    x_img = x_.reshape(B, H, W, D).astype(jnp.bfloat16)

    # Pre-permute conv output channels (d, i, j) -> (i, j, d) so the pixel
    # shuffle below never moves D off the lane axis.  (In a real model this is
    # done once at weight-load time, not per forward pass.)
    w_perm = w_hwio.reshape(3, 3, D, D, r, r)
    w_perm = jnp.transpose(w_perm, (0, 1, 2, 4, 5, 3))          # (3,3,Cin,r,r,D)
    w_flat = w_perm.reshape(9 * D, Dout).astype(jnp.bfloat16)   # rows: tap-major, then Cin
    b_perm = jnp.transpose(bias.reshape(D, r, r), (1, 2, 0)).reshape(Dout)

    y = conv3x3_pallas(x_img, w_flat, b_perm, x.dtype)          # (B, H, W, r*r*D)

    # PixelShuffle(r): channel (i, j, d) -> output pixel (h*r+i, w*r+j), chan d.
    # D stays last (lane axis) throughout: sublane-only permute.
    y = y.reshape(B, H, W, r, r, D)
    y = jnp.transpose(y, (0, 1, 3, 2, 4, 5))                     # (B, H, r, W, r, D)
    y = y.reshape(B, H * r * W * r, D)

    return jnp.concatenate([cls_token, y], axis=1)


def _reference(x, w_hwio, bias, upscale_factor):
    """Pure-JAX reference following PyTorch's original (d, i, j) PixelShuffle
    channel order — independently verifies the weight/channel permutation."""
    r = upscale_factor
    cls_token = x[:, :1, :]
    x_ = x[:, 1:, :]
    B, N, D = x_.shape
    H = W = int(round(N ** 0.5))
    x_img = x_.reshape(B, H, W, D).astype(jnp.bfloat16)
    y = lax.conv_general_dilated(
        x_img, w_hwio.astype(jnp.bfloat16), window_strides=(1, 1),
        padding="SAME", dimension_numbers=("NHWC", "HWIO", "NHWC"),
        preferred_element_type=jnp.float32)
    y = y + bias.reshape(1, 1, 1, -1).astype(jnp.float32)
    y = y.reshape(B, H, W, D, r, r)
    y = jnp.transpose(y, (0, 1, 4, 2, 5, 3)).reshape(B, H * r * W * r, D)
    y = y.astype(x.dtype)
    return jnp.concatenate([cls_token, y], axis=1)


if __name__ == "__main__":
    B, D, r = 2, 32, 2
    H = W = 8
    N = H * W                       # 64 patch tokens
    Dout = D * r * r                # 128

    key = jax.random.PRNGKey(0)
    k_x, k_w, k_b = jax.random.split(key, 3)

    x = jax.random.normal(k_x, (B, 1 + N, D), dtype=jnp.float32)
    # "Conv2d(D, D*r^2, 3, padding=1)" parameters, HWIO layout.
    w_hwio = jax.random.normal(k_w, (3, 3, D, Dout), dtype=jnp.float32) * 0.05
    bias = jax.random.normal(k_b, (Dout,), dtype=jnp.float32) * 0.05

    out = jax.block_until_ready(decoder_upsample_block(x, w_hwio, bias, r))
    ref = jax.block_until_ready(_reference(x, w_hwio, bias, r))

    assert out.shape == (B, 1 + N * r * r, D), out.shape
    max_err = float(jnp.max(jnp.abs(out - ref)))
    assert max_err < 1e-2, max_err
    print("KERNEL_OK")
</pallas_src>

<mosaic_0001>
module attributes {stable_mosaic.version = 11 : i64} {
  func.func @_conv3x3_im2col_kernel(%arg0: i32, %arg1: i32, %arg2: memref<1x8x8x32xbf16, #tpu.memory_space<vmem>>, %arg3: memref<288x128xbf16, #tpu.memory_space<vmem>>, %arg4: memref<1x128xf32, #tpu.memory_space<vmem>>, %arg5: memref<1x8x8x128xf32, #tpu.memory_space<vmem>>, %arg6: memref<10x10x32xf32, #tpu.memory_space<vmem>>, %arg7: memref<64x288xbf16, #tpu.memory_space<vmem>>) attributes {dimension_semantics = [#tpu.dimension_semantics<parallel>, #tpu.dimension_semantics<arbitrary>], iteration_bounds = array<i64: 2, 1>, scalar_prefetch = 0 : i64, scratch_operands = 2 : i64, tpu.core_type = #tpu.core_type<tc>, window_params = [{transform_indices = @transform_0, window_bounds = array<i64: 1, 8, 8, 32>}, {transform_indices = @transform_1, window_bounds = array<i64: 288, 128>}, {transform_indices = @transform_2, window_bounds = array<i64: 1, 128>}, {transform_indices = @transform_3, window_bounds = array<i64: 1, 8, 8, 128>}]} {
    %c0_i32 = arith.constant 0 : i32
    %0 = arith.cmpi eq, %arg1, %c0_i32 : i32
    %1 = arith.extui %0 : i1 to i32
    %c0_i32_0 = arith.constant 0 : i32
    %2 = arith.cmpi ne, %1, %c0_i32_0 : i32
    scf.if %2 {
      %cst_10 = arith.constant 0.000000e+00 : f32
      %11 = vector.broadcast %cst_10 : f32 to vector<10x10x32xf32>
      %c0_11 = arith.constant 0 : index
      %c0_12 = arith.constant 0 : index
      %c0_13 = arith.constant 0 : index
      %12 = vector.load %arg6[%c0_11, %c0_12, %c0_13] : memref<10x10x32xf32, #tpu.memory_space<vmem>>, vector<10x10x32xf32>
      tpu.vector_store %arg6[%c0_11, %c0_12, %c0_13], %11 {strides = array<i32>} : memref<10x10x32xf32, #tpu.memory_space<vmem>>, vector<10x10x32xf32>,
      %c0_14 = arith.constant 0 : index
      %c0_15 = arith.constant 0 : index
      %c0_16 = arith.constant 0 : index
      %c0_17 = arith.constant 0 : index
      %13 = vector.load %arg2[%c0_14, %c0_15, %c0_16, %c0_17] : memref<1x8x8x32xbf16, #tpu.memory_space<vmem>>, vector<1x8x8x32xbf16>
      %14 = vector.shape_cast %13 : vector<1x8x8x32xbf16> to vector<8x8x32xbf16>
      %15 = arith.extf %14 : vector<8x8x32xbf16> to vector<8x8x32xf32>
      %c1 = arith.constant 1 : index
      %c1_18 = arith.constant 1 : index
      %c0_19 = arith.constant 0 : index
      %16 = vector.load %arg6[%c1, %c1_18, %c0_19] : memref<10x10x32xf32, #tpu.memory_space<vmem>>, vector<8x8x32xf32>
      tpu.vector_store %arg6[%c1, %c1_18, %c0_19], %15 {strides = array<i32>} : memref<10x10x32xf32, #tpu.memory_space<vmem>>, vector<8x8x32xf32>,
      %c0_20 = arith.constant 0 : index
      %c0_21 = arith.constant 0 : index
      %c0_22 = arith.constant 0 : index
      %17 = vector.load %arg6[%c0_20, %c0_21, %c0_22] : memref<10x10x32xf32, #tpu.memory_space<vmem>>, vector<8x8x32xf32>
      %18 = vector.shape_cast %17 : vector<8x8x32xf32> to vector<64x32xf32>
      %19 = arith.truncf %18 : vector<64x32xf32> to vector<64x32xbf16>
      %c0_23 = arith.constant 0 : index
      %c1_24 = arith.constant 1 : index
      %c0_25 = arith.constant 0 : index
      %20 = vector.load %arg6[%c0_23, %c1_24, %c0_25] : memref<10x10x32xf32, #tpu.memory_space<vmem>>, vector<8x8x32xf32>
      %21 = vector.shape_cast %20 : vector<8x8x32xf32> to vector<64x32xf32>
      %22 = arith.truncf %21 : vector<64x32xf32> to vector<64x32xbf16>
      %c0_26 = arith.constant 0 : index
      %c2 = arith.constant 2 : index
      %c0_27 = arith.constant 0 : index
      %23 = vector.load %arg6[%c0_26, %c2, %c0_27] : memref<10x10x32xf32, #tpu.memory_space<vmem>>, vector<8x8x32xf32>
      %24 = vector.shape_cast %23 : vector<8x8x32xf32> to vector<64x32xf32>
      %25 = arith.truncf %24 : vector<64x32xf32> to vector<64x32xbf16>
      %c1_28 = arith.constant 1 : index
      %c0_29 = arith.constant 0 : index
      %c0_30 = arith.constant 0 : index
      %26 = vector.load %arg6[%c1_28, %c0_29, %c0_30] : memref<10x10x32xf32, #tpu.memory_space<vmem>>, vector<8x8x32xf32>
      %27 = vector.shape_cast %26 : vector<8x8x32xf32> to vector<64x32xf32>
      %28 = arith.truncf %27 : vector<64x32xf32> to vector<64x32xbf16>
      %c1_31 = arith.constant 1 : index
      %c1_32 = arith.constant 1 : index
      %c0_33 = arith.constant 0 : index
      %29 = vector.load %arg6[%c1_31, %c1_32, %c0_33] : memref<10x10x32xf32, #tpu.memory_space<vmem>>, vector<8x8x32xf32>
      %30 = vector.shape_cast %29 : vector<8x8x32xf32> to vector<64x32xf32>
      %31 = arith.truncf %30 : vector<64x32xf32> to vector<64x32xbf16>
      %c1_34 = arith.constant 1 : index
      %c2_35 = arith.constant 2 : index
      %c0_36 = arith.constant 0 : index
      %32 = vector.load %arg6[%c1_34, %c2_35, %c0_36] : memref<10x10x32xf32, #tpu.memory_space<vmem>>, vector<8x8x32xf32>
      %33 = vector.shape_cast %32 : vector<8x8x32xf32> to vector<64x32xf32>
      %34 = arith.truncf %33 : vector<64x32xf32> to vector<64x32xbf16>
      %c2_37 = arith.constant 2 : index
      %c0_38 = arith.constant 0 : index
      %c0_39 = arith.constant 0 : index
      %35 = vector.load %arg6[%c2_37, %c0_38, %c0_39] : memref<10x10x32xf32, #tpu.memory_space<vmem>>, vector<8x8x32xf32>
      %36 = vector.shape_cast %35 : vector<8x8x32xf32> to vector<64x32xf32>
      %37 = arith.truncf %36 : vector<64x32xf32> to vector<64x32xbf16>
      %c2_40 = arith.constant 2 : index
      %c1_41 = arith.constant 1 : index
      %c0_42 = arith.constant 0 : index
      %38 = vector.load %arg6[%c2_40, %c1_41, %c0_42] : memref<10x10x32xf32, #tpu.memory_space<vmem>>, vector<8x8x32xf32>
      %39 = vector.shape_cast %38 : vector<8x8x32xf32> to vector<64x32xf32>
      %40 = arith.truncf %39 : vector<64x32xf32> to vector<64x32xbf16>
      %c2_43 = arith.constant 2 : index
      %c2_44 = arith.constant 2 : index
      %c0_45 = arith.constant 0 : index
      %41 = vector.load %arg6[%c2_43, %c2_44, %c0_45] : memref<10x10x32xf32, #tpu.memory_space<vmem>>, vector<8x8x32xf32>
      %42 = vector.shape_cast %41 : vector<8x8x32xf32> to vector<64x32xf32>
      %43 = arith.truncf %42 : vector<64x32xf32> to vector<64x32xbf16>
      %44 = tpu.concatenate %19, %22, %25, %28, %31, %34, %37, %40, %43 in 1 : vector<64x32xbf16>, vector<64x32xbf16>, vector<64x32xbf16>, vector<64x32xbf16>, vector<64x32xbf16>, vector<64x32xbf16>, vector<64x32xbf16>, vector<64x32xbf16>, vector<64x32xbf16> -> vector<64x288xbf16>
      %c0_46 = arith.constant 0 : index
      %c0_47 = arith.constant 0 : index
      %45 = vector.load %arg7[%c0_46, %c0_47] : memref<64x288xbf16, #tpu.memory_space<vmem>>, vector<64x288xbf16>
      tpu.vector_store %arg7[%c0_46, %c0_47], %44 {strides = array<i32>} : memref<64x288xbf16, #tpu.memory_space<vmem>>, vector<64x288xbf16>,
    } else {
    }
    %c0 = arith.constant 0 : index
    %c0_1 = arith.constant 0 : index
    %3 = vector.load %arg7[%c0, %c0_1] : memref<64x288xbf16, #tpu.memory_space<vmem>>, vector<64x288xbf16>
    %c0_2 = arith.constant 0 : index
    %c0_3 = arith.constant 0 : index
    %4 = vector.load %arg3[%c0_2, %c0_3] : memref<288x128xbf16, #tpu.memory_space<vmem>>, vector<288x128xbf16>
    %cst = arith.constant dense<0.000000e+00> : vector<64x128xf32>
    %5 = tpu.matmul %3, %4, %cst {dimension_numbers = #tpu.dot_dimension_numbers<[1], [0], [0], [1], [0, 0, 1, 1], [], []>} : vector<64x288xbf16>, vector<288x128xbf16>, vector<64x128xf32> -> vector<64x128xf32>
    %c0_4 = arith.constant 0 : index
    %c0_5 = arith.constant 0 : index
    %6 = vector.load %arg4[%c0_4, %c0_5] : memref<1x128xf32, #tpu.memory_space<vmem>>, vector<1x128xf32>
    %7 = vector.broadcast %6 : vector<1x128xf32> to vector<64x128xf32>
    %8 = arith.addf %5, %7 : vector<64x128xf32>
    %9 = vector.shape_cast %8 : vector<64x128xf32> to vector<1x8x8x128xf32>
    %c0_6 = arith.constant 0 : index
    %c0_7 = arith.constant 0 : index
    %c0_8 = arith.constant 0 : index
    %c0_9 = arith.constant 0 : index
    %10 = vector.load %arg5[%c0_6, %c0_7, %c0_8, %c0_9] : memref<1x8x8x128xf32, #tpu.memory_space<vmem>>, vector<1x8x8x128xf32>
    tpu.vector_store %arg5[%c0_6, %c0_7, %c0_8, %c0_9], %9 {strides = array<i32>} : memref<1x8x8x128xf32, #tpu.memory_space<vmem>>, vector<1x8x8x128xf32>,
    return
  }
  func.func @transform_0(%arg0: i32, %arg1: i32) -> (i32, i32, i32, i32) {
    %c0_i32 = arith.constant 0 : i32
    %c0_i32_0 = arith.constant 0 : i32
    %c0_i32_1 = arith.constant 0 : i32
    %c0_i32_2 = arith.constant 0 : i32
    return %arg0, %c0_i32, %c0_i32_0, %c0_i32_1 : i32, i32, i32, i32
  }
  func.func @transform_1(%arg0: i32, %arg1: i32) -> (i32, i32) {
    %c0_i32 = arith.constant 0 : i32
    %c0_i32_0 = arith.constant 0 : i32
    return %c0_i32, %arg1 : i32, i32
  }
  func.func @transform_2(%arg0: i32, %arg1: i32) -> (i32, i32) {
    %c0_i32 = arith.constant 0 : i32
    %c0_i32_0 = arith.constant 0 : i32
    return %c0_i32, %arg1 : i32, i32
  }
  func.func @transform_3(%arg0: i32, %arg1: i32) -> (i32, i32, i32, i32) {
    %c0_i32 = arith.constant 0 : i32
    %c0_i32_0 = arith.constant 0 : i32
    %c0_i32_1 = arith.constant 0 : i32
    return %arg0, %c0_i32, %c0_i32_0, %arg1 : i32, i32, i32, i32
  }
}

</mosaic_0001>

<bundles_post_ra>
// kernel: tpu_custom_call.1
= control target key start
LH: loop header
LB: loop body
LE: loop exit
PB: predicated region body
PF: predicated region fallthrough
CT: control target
= control target key end

     0   :  { %8 = vsyncpa [#allocation5], 0  ;;  %s1820_s0 = inlined_call_operand.hbm [shape: bf16[2,8,8,32], index: 0, kind: input, shape index: {}]   ;;  %s1821_s1 = inlined_call_operand.hbm [shape: bf16[288,128], index: 1, kind: input, shape index: {}]   ;;  %s1822_s2 = inlined_call_operand.vmem [shape: f32[1,128], index: 2, kind: input, shape index: {}]   ;;  %s1823_s3 = inlined_call_operand.hbm [shape: f32[2,8,8,128], index: 3, kind: output, shape index: {}]  }
   0x1   :  { %10 = vsyncpa [#allocation5 + $0x1], 0 }
   0x2   :  { %11 = vsyncpa [#allocation8], 0 }
   0x3   :  { %12 = vsyncpa [#allocation6], 0 }
   0x4   :  { %14 = vsyncpa [#allocation6 + $0x1], 0  ;;  %s1398_s12 = smov 0   ;;  %s1400_s13 = smov 0  }
   0x5   :  { %s1402_s14 = smov 0   ;;  %s1404_s15 = smov 0  }
   0x6   :  { %s1406_s16 = smov 0   ;;  %s1408_s17 = smov 0  }
   0x7 LB: > { %s986_s18 = sadd.s32 4294967295, %s1365_s17   ;;  %s987_s19 = sadd.s32 4294967294, %s1365_s17   ;;  %s1365_s17 = sphi %s1408_s17, %s20_s17   ;;  %s1361_s16 = sphi %s1406_s16, %s1847_s16   ;;  %s1357_s15 = sphi %s1404_s15, %s1846_s15   ;;  %s1353_s14 = sphi %s1402_s14, %s1845_s14   ;;  %s1349_s13 = sphi %s1400_s13, %s1844_s13   ;;  %s1345_s12 = sphi %s1398_s12, %s1843_s12  }
   0x8   : > { %p52_p0 = scmp.ne.s32.totalorder %s1349_s13, %s1345_s12  ;;  %p1432_p1 = scmp.eq.s32.totalorder %s986_s18, 0 }
   0x9   : > { %p1436_p2 = scmp.eq.s32.totalorder %s986_s18, 1  ;;  %p136_p3 = scmp.eq.s32.totalorder %s987_s19, 1 }
   0xa   : > { %s1828_s20 = scalar_select %p1432_p1, 1, 0 }
   0xb   : > { %s1829_s21 = scalar_select %p1436_p2, 1, 0 }
   0xc   : > { %p1442_p4 = por %p1432_p1, %p52_p0  ;;  %p988_p5 = scmp.ge.s32.totalorder %s1365_s17, 1 }
   0xd   : > { %p1447_p6 = por %p136_p3, %p52_p0  ;;  %p143_p7 = scmp.lt.s32.totalorder %s1365_s17, 3 }
   0xe   : > { %s1830_s22 = scalar_select %p1442_p4, 1, 0 }
   0xf   : > { %s1831_s23 = scalar_select %p1447_p6, 1, 0 }
  0x10   : > { %p1452_p8 = pnand %p988_p5, %p143_p7  ;;  %s1367_s25 = smov [#allocation7]  }
  0x11   : > { %s157_s26 = sshll.u32 %s1367_s25, 4  ;;  %s32_s28 = sadd.s32 1, %s1361_s16  ;;  %s158_s26 = int_to_ptr.vmem [resolvable:$true] %s157_s26 }
  0x12   : > { %s1832_s24 = scalar_select %p1452_p8, 1, 0 }
  0x13   : > { %p1130_p9 = pneg %p1452_p8  ;;  %s1221_s4 = scalar_lea.hbm %s1821_s1, 2304 }
  0x14   : > { %p1222_p12 = scmp.ne.s32.totalorder %s1821_s1, %s1221_s4  ;;  %p1228_p5 = scmp.lt.u32.totalorder %s1221_s4, %s1821_s1 }
  0x15   : > { %p1461_p11 = pnand %p1130_p9, %p1432_p1 }
  0x17   : > { %p1223_p13 = pneg %p1461_p11 }
  0x19   : > { %p1224_p0 = pnand %p1223_p13, %p1222_p12 }
  0x1b   : > { %p1225_p3 = pneg %p1224_p0 }
  0x1d   : > { %p1230_p7 = pnand %p1228_p5, %p1225_p3 }
  0x1f   : > { %1233 = shalt.err (!%p1230_p7)
}
  0x20   : > { %s1234_s9 = scalar_lea.vmem %s158_s26, 2304  ;;  %p1242_p1 = scmp.lt.s32.totalorder %s158_s26, %s158_s26 }
  0x21   : > { %p1235_p9 = scmp.ne.s32.totalorder %s158_s26, %s1234_s9  ;;  %p1243_p4 = scmp.lt.s32.totalorder %s1234_s9, %s1234_s9 }
  0x23   : > { %p1237_p10 = pnand %p1235_p9, %p1223_p13  ;;  %p1244_p8 = por %p1243_p4, %p1242_p1 }
  0x25   : > { %p1238_p6 = pneg %p1237_p10 }
  0x27   : > { %p1245_p2 = pnand %p1244_p8, %p1238_p6 }
  0x29   : > { %1248 = shalt.err (!%p1245_p2)
}
  0x2a   : > { %s1368_s10 = smov 64   ;;  %s1369_s11 = smov 4  }
  0x2b   : > { %1133 = dma.hbm_to_vmem [thread:$0]  (!%p1461_p11), %s1821_s1, 2304, %s158_s26, [#allocation8], %s1368_s10, %s1368_s10, %s1369_s11  }
  0x2c   : > { %p34_p1 = scmp.ge.s32.totalorder %s32_s28, 2  ;;  %s39_s25 = sadd.s32 1, %s1353_s14 }
  0x2d   : > { %p46_p2 = scmp.ne.s32.totalorder %s1353_s14, %s1349_s13  ;;  %p47_p4 = scmp.eq.s32.totalorder %s1365_s17, 0 }
  0x2e   : > { %s1849_s28 = smov (%p34_p1, %s32_s28), 0  ;;  %p1835_p8 = scmp.ne.s32.totalorder %s1829_s21, 0 }
  0x2f   : > { %p1491_p6 = por %p47_p4, %p46_p2  ;;  %s36_s30 = ssub.s32 %s1361_s16, %s1849_s28 }
  0x30   : > { %p1497_p10 = por %p1835_p8, %p46_p2  ;;  %p1143_p12 = scmp.lt.s32.totalorder %s1365_s17, 2 }
  0x31   : > { %p37_p11 = scmp.eq.s32.totalorder %s36_s30, 0  ;;  %s177_s26 = sand.u32 1, %s1353_s14  }
  0x32   : > { %s992_s4 = sshll.u32 %s177_s26, 5  ;;  %s1027_s6 = sshll.u32 %s1361_s16, 9 }
  0x33   : > { %s1506_s5 = scalar_select %p37_p11, %s1353_s14, %s39_s25  }
  0x34   : > { %s1512_s9 = scalar_lea.hbm %s1820_s0, %s1027_s6  ;;  %s181_s21 = scalar_lea.vmem [#allocation4], %s992_s4 }
  0x35   : > { %s188_s18 = sshll.u32 %s181_s21, 4  ;;  %p1518_p13 = pnand %p1143_p12, %p1491_p6  ;;  %s1514_s18 = int_to_ptr.vmem [resolvable:$true] %s188_s18 }
  0x36   : > { %s1522_s25 = scalar_lea.sflag [#allocation5], %s177_s26  ;;  %s1249_s30 = scalar_lea.hbm %s1512_s9, 512 }
  0x37   : > { %p1250_p0 = scmp.ne.s32.totalorder %s1512_s9, %s1249_s30  ;;  %p1251_p3 = pneg %p1518_p13 }
  0x38   : > { %s1254_s29 = scalar_lea.hbm %s1820_s0, 1024  ;;  %p1255_p9 = scmp.lt.u32.totalorder %s1512_s9, %s1820_s0 }
  0x39   : > { %p1252_p5 = pnand %p1251_p3, %p1250_p0  ;;  %p1256_p1 = scmp.lt.u32.totalorder %s1254_s29, %s1249_s30 }
  0x3a   : > { %p1258_p4 = scmp.lt.u32.totalorder %s1249_s30, %s1512_s9 }
  0x3b   : > { %p1253_p7 = pneg %p1252_p5  ;;  %p1257_p2 = por %p1256_p1, %p1255_p9 }
  0x3d   : > { %p1259_p6 = por %p1258_p4, %p1257_p2 }
  0x3f   : > { %p1260_p8 = pnand %p1259_p6, %p1253_p7 }
  0x41   : > { %1263 = shalt.err (!%p1260_p8)
}
  0x42   : > { %s1264_s26 = scalar_lea.vmem %s1514_s18, 512  ;;  %s1370_s21 = smov [#allocation4]  }
  0x43   : > { %p1265_p12 = scmp.ne.s32.totalorder %s1514_s18, %s1264_s26  ;;  %s1269_s4 = sshll.u32 %s1370_s21, 4  ;;  %s1270_s4 = int_to_ptr.vmem [resolvable:$false] %s1269_s4 }
  0x44   : > { %s1271_s6 = scalar_lea.vmem %s1270_s4, 1024  ;;  %p1272_p5 = scmp.lt.s32.totalorder %s1514_s18, %s1270_s4 }
  0x45   : > { %p1267_p11 = pnand %p1265_p12, %p1251_p3  ;;  %p1273_p9 = scmp.lt.s32.totalorder %s1271_s6, %s1264_s26 }
  0x47   : > { %p1268_p0 = pneg %p1267_p11  ;;  %p1274_p1 = por %p1273_p9, %p1272_p5 }
  0x49   : > { %p1275_p2 = pnand %p1274_p1, %p1268_p0 }
  0x4b   : > { %1278 = shalt.err (!%p1275_p2)
}
  0x4c   : > { %1137 = dma.hbm_to_vmem [thread:$0]  (!%p1518_p13), %s1512_s9, 512, %s1514_s18, %s1522_s25, %s1368_s10, %s1368_s10, %s1369_s11  }
  0x4d   : > { %p1838_p3 = scmp.ne.s32.totalorder %s1832_s24, 0 }
  0x4e   : > { %s1556_s30 = sand.u32 (!%p1838_p3), 1, %s1349_s13   ;;  %p1839_p7 = scmp.ne.s32.totalorder (!%p1838_p3), %s1830_s22, 0 }
  0x4f   : > { %200 = sbr.rel (%p1838_p3) target bundleno = 509 (0x1fd), region = 32  ;;  %s996_s29 = sshll.u32 (!%p1838_p3), %s1556_s30, 5 }
  0x50   : > { %s203_s7 = scalar_lea.sflag (!%p1838_p3), [#allocation5], %s1556_s30  ;;  %s1560_s8 = scalar_lea.vmem (!%p1838_p3), [#allocation4], %s996_s29 }
  0x56   : > { %1332 = dma.done.wait (%p1839_p7), %s203_s7, 512  }
  0x57   : > { %1334 = vsyncadd (%p1839_p7), %s203_s7, 4294966784  ;;  %p1840_p13 = scmp.ne.s32.totalorder %s1828_s20, 0 }
  0x59   : > { %1336 = dma.done.wait (%p1840_p13), [#allocation8], 2304  }
  0x5a   : > { %1338 = vsyncadd (%p1840_p13), [#allocation8], 4294964992  ;;  %vm244_vm0 = vcmask 261120   ;;  %vm246_vm1 = vcmask 254976   ;;  %v1371_v0 = vmov 0.0   ;;  %v1030_v1 = vld [vmem:[%s1560_s8] sm:$0xff]  }
  0x5b   : > { %250 = vst.msk [vmem:[#allocation2 + $0x20] sm:$0xff] %vm244_vm0, %v1371_v0  ;;  %252 = vst.msk [vmem:[#allocation2 + $0x30] sm:$0xff] %vm244_vm0, %v1371_v0  ;;  %v1045_v2 = vld [vmem:[%s1560_s8 + $0x8] sm:$0xff]   ;;  %v1046_v3 = vld [vmem:[%s1560_s8 + $0x10] sm:$0xff]   ;;  %v1032_v4 = vunpack.c.h.bf16 %v1030_v1  ;;  %v1031_v7 = vunpack.c.l.bf16 %v1030_v1  ;;  %s1372_s20 = smov 64   ;;  %s1373_s22 = smov 32  }
  0x5c   : > { %251 = vst.msk [vmem:[#allocation2 + $0x28] sm:$0x3] %vm246_vm1, %v1371_v0  ;;  %253 = vst.msk [vmem:[#allocation2 + $0x38] sm:$0x3] %vm246_vm1, %v1371_v0  ;;  %v1035_v5 = vunpack.c.l.bf16 %v1045_v2  ;;  %v1036_v6 = vunpack.c.h.bf16 %v1045_v2  ;;  %v1047_v8 = vld [vmem:[%s1560_s8 + $0x18] sm:$0xff]   ;;  %v1040_v9 = vunpack.c.h.bf16 %v1046_v3  ;;  %v1039_v12 = vunpack.c.l.bf16 %v1046_v3  ;;  %v1203_v13 = vld [vmem:[#allocation7 + $0x40] sm:$0xff]  }
  0x5d   : > { %245 = vst.msk [vmem:[#allocation2] sm:$0xff] %vm244_vm0, %v1371_v0  ;;  %248 = vst.msk [vmem:[#allocation2 + $0x10] sm:$0xff] %vm244_vm0, %v1371_v0  ;;  %v1043_v10 = vunpack.c.l.bf16 %v1047_v8  ;;  %v1044_v11 = vunpack.c.h.bf16 %v1047_v8  ;;  %v1204_v14 = vld [vmem:[#allocation7] sm:$0xff]   ;;  %1048 = vmatprep.subr.bf16.mxu0 %v1203_v13  ;;  %v1205_v15 = vld [vmem:[#allocation7 + $0x48] sm:$0xff]   ;;  %1106 = vmatprep.subr.bf16.mxu1 %v1203_v13  ;;  %s1374_s24 = smov 96   ;;  %vm484_vm2 = vcmask 523264  }
  0x5e   : > { %247 = vst.msk [vmem:[#allocation2 + $0x8] sm:$0x3] %vm246_vm1, %v1371_v0  ;;  %249 = vst.msk [vmem:[#allocation2 + $0x18] sm:$0x3] %vm246_vm1, %v1371_v0  ;;  %1049 = vmatpush3.bf16.msra.mxu0 %v1204_v14  ;;  %v1206_v16 = vld [vmem:[#allocation7 + $0x8] sm:$0xff]   ;;  %1114 = vmatpush3.bf16.msra.mxu1 %v1204_v14  ;;  %v1207_v17 = vld [vmem:[#allocation7 + $0x50] sm:$0xff]  }
  0x5f   : > { %254 = vst.msk [vmem:[#allocation2 + $0x40] sm:$0xff] %vm244_vm0, %v1371_v0  ;;  %256 = vst.msk [vmem:[#allocation2 + $0x50] sm:$0xff] %vm244_vm0, %v1371_v0  ;;  %1050 = vmatprep.subr.bf16.mxu0 %v1205_v15  ;;  %1107 = vmatprep.subr.bf16.mxu1 %v1205_v15  ;;  %v1208_v20 = vld [vmem:[#allocation7 + $0x10] sm:$0xff]   ;;  %v1209_v27 = vld [vmem:[#allocation7 + $0x58] sm:$0xff]   ;;  %vm493_vm3 = vcmask 785408   ;;  %s998_s9 = sshll.u32 %s1556_s30, 6 }
  0x60   : > { %255 = vst.msk [vmem:[#allocation2 + $0x48] sm:$0x3] %vm246_vm1, %v1371_v0  ;;  %257 = vst.msk [vmem:[#allocation2 + $0x58] sm:$0x3] %vm246_vm1, %v1371_v0  ;;  %v1210_v50 = vld [vmem:[#allocation7 + $0x18] sm:$0xff]   ;;  %v1211_v51 = vld [vmem:[#allocation7 + $0x60] sm:$0xff]  }
  0x61   : > { %258 = vst.msk [vmem:[#allocation2 + $0x60] sm:$0xff] %vm244_vm0, %v1371_v0  ;;  %260 = vst.msk [vmem:[#allocation2 + $0x70] sm:$0xff] %vm244_vm0, %v1371_v0  ;;  %v1212_v52 = vld [vmem:[#allocation7 + $0x20] sm:$0xff]   ;;  %v1213_v55 = vld [vmem:[#allocation7 + $0x68] sm:$0xff]   ;;  %s1754_s18 = scalar_lea.vmem [#allocation9], %s998_s9  ;;  %s1028_s25 = sshll.u32 %s1357_s15, 10 }
  0x62   : > { %259 = vst.msk [vmem:[#allocation2 + $0x68] sm:$0x3] %vm246_vm1, %v1371_v0  ;;  %261 = vst.msk [vmem:[#allocation2 + $0x78] sm:$0x3] %vm246_vm1, %v1371_v0  ;;  %1051 = vmatpush3.bf16.msra.mxu0 %v1206_v16  ;;  %1115 = vmatpush3.bf16.msra.mxu1 %v1206_v16  ;;  %v1214_v60 = vld [vmem:[#allocation7 + $0x28] sm:$0xff]   ;;  %v1215_v61 = vld [vmem:[#allocation7 + $0x70] sm:$0xff]   ;;  %s1769_s4 = scalar_lea.hbm %s1823_s3, %s1028_s25 }
  0x63   : > { %262 = vst.msk [vmem:[#allocation2 + $0x80] sm:$0xff] %vm244_vm0, %v1371_v0  ;;  %264 = vst.msk [vmem:[#allocation2 + $0x90] sm:$0xff] %vm244_vm0, %v1371_v0  ;;  %1052 = vmatprep.subr.bf16.mxu0 %v1207_v17  ;;  %1108 = vmatprep.subr.bf16.mxu1 %v1207_v17  ;;  %v1216_v1 = vld [vmem:[#allocation7 + $0x30] sm:$0xff]   ;;  %v1217_v3 = vld [vmem:[#allocation7 + $0x78] sm:$0xff]   ;;  %s879_s19 = sshll.u32 %s1754_s18, 4  ;;  %s865_s6 = scalar_lea.sflag [#allocation6], %s1556_s30  ;;  %s1764_s19 = int_to_ptr.vmem [resolvable:$true] %s879_s19 }
  0x64   : > { %263 = vst.msk [vmem:[#allocation2 + $0x88] sm:$0x3] %vm246_vm1, %v1371_v0  ;;  %265 = vst.msk [vmem:[#allocation2 + $0x98] sm:$0x3] %vm246_vm1, %v1371_v0  ;;  %v1673_v8 = vld [vmem:[#allocation7 + $0x80] sm:$0xff]   ;;  %s1279_s29 = scalar_lea.vmem %s1764_s19, 1024 }
  0x65   : > { %284 = vst.msk [vmem:[#allocation2 + $0x21] sm:$0xff] %vm244_vm0, %v1032_v4  ;;  %285 = vst.msk [vmem:[#allocation2 + $0x31] sm:$0xff] %vm244_vm0, %v1035_v5  ;;  %v315_v18 = vld [vmem:[#allocation2 + $0x2] sm:$0xff]  ;;  %p1280_p4 = scmp.ne.s32.totalorder %s1764_s19, %s1279_s29  ;;  %s1375_s15 = smov [#allocation9]  }
  0x66   : > { %283 = vst.msk [vmem:[#allocation2 + $0x11] sm:$0xff] %vm244_vm0, %v1031_v7  ;;  %286 = vst.msk [vmem:[#allocation2 + $0x41] sm:$0xff] %vm244_vm0, %v1036_v6  ;;  %v303_v19 = vld [vmem:[#allocation2 + $0x1] sm:$0xff]  ;;  %1053 = vmatpush3.bf16.msra.mxu0 %v1208_v20  ;;  %1116 = vmatpush3.bf16.msra.mxu1 %v1208_v20  ;;  %v1218_v7 = vld [vmem:[#allocation7 + $0x38] sm:$0xff]   ;;  %s1283_s7 = sshll.u32 %s1375_s15, 4  ;;  %s1284_s7 = int_to_ptr.vmem [resolvable:$false] %s1283_s7 }
  0x67   : > { %288 = vst.msk [vmem:[#allocation2 + $0x61] sm:$0xff] %vm244_vm0, %v1040_v9  ;;  %289 = vst.msk [vmem:[#allocation2 + $0x71] sm:$0xff] %vm244_vm0, %v1043_v10  ;;  %1054 = vmatprep.subr.bf16.mxu0 %v1209_v27  ;;  %1109 = vmatprep.subr.bf16.mxu1 %v1209_v27  ;;  %p1281_p6 = pnand %p1280_p4, %p1497_p10  ;;  %s1285_s8 = scalar_lea.vmem %s1284_s7, 2048 }
  0x68   : > { %290 = vst.msk [vmem:[#allocation2 + $0x81] sm:$0xff] %vm244_vm0, %v1044_v11  ;;  %287 = vst.msk [vmem:[#allocation2 + $0x51] sm:$0xff] %vm244_vm0, %v1039_v12  ;;  %p1286_p12 = scmp.lt.s32.totalorder %s1764_s19, %s1284_s7  ;;  %p1287_p11 = scmp.lt.s32.totalorder %s1285_s8, %s1279_s29 }
  0x69   : > { %p1282_p8 = pneg %p1281_p6 }
  0x6a   : > { %1055 = vmatpush3.bf16.msra.mxu0 %v1210_v50  ;;  %1117 = vmatpush3.bf16.msra.mxu1 %v1210_v50  ;;  %v371_v54 = vld [vmem:[#allocation2 + $0x90] sm:$0xff]  ;;  %p1288_p0 = por %p1287_p11, %p1286_p12 }
  0x6b   : > { %1056 = vmatprep.subr.bf16.mxu0 %v1211_v51  ;;  %1110 = vmatprep.subr.bf16.mxu1 %v1211_v51  ;;  %v383_v0 = vld [vmem:[#allocation2 + $0x91] sm:$0xff] }
  0x6c   : > { %v364_v21 = vld [vmem:[#allocation2 + $0x20] sm:$0xff]  ;;  %v1602_v22 = vld [vmem:[#allocation2 + $0x30] sm:$0xff]  ;;  %p1289_p5 = pnand %p1288_p0, %p1282_p8 }
  0x6d   : > { %v351_v23 = vld [vmem:[#allocation2 + $0x12] sm:$0xff]  ;;  %v1605_v24 = vpack.c.bf16 %v1602_v22, %v364_v21  ;;  %v352_v25 = vld [vmem:[#allocation2 + $0x22] sm:$0xff] }
  0x6e   : > { %v1607_v26 = vld [vmem:[#allocation2 + $0x11] sm:$0xff]  ;;  %v359_v28 = vpack.c.bf16 %v352_v25, %v351_v23  ;;  %v1609_v29 = vld [vmem:[#allocation2 + $0x21] sm:$0xff]  ;;  %v323_v30 = vpack.c.bf16 %v351_v23, %v315_v18  ;;  %1057 = vmatpush3.bf16.msra.mxu0 %v1212_v52  ;;  %1118 = vmatpush3.bf16.msra.mxu1 %v1212_v52 }
  0x6f   : > { %452 = vrot.lane.b32.xlu1 %v1605_v24, %s1372_s20  ;;  %v1613_v31 = vld [vmem:[#allocation2 + $0x10] sm:$0xff]  ;;  %v347_v32 = vpack.c.bf16 %v1609_v29, %v1607_v26  ;;  %v311_v33 = vpack.c.bf16 %v1607_v26, %v303_v19  ;;  %v1621_v36 = vld [vmem:[#allocation2 + $0x62] sm:$0xff]  ;;  %1058 = vmatprep.subr.bf16.mxu0 %v1213_v55 }
  0x70   : > { %440 = vrot.lane.b32.xlu0 %v359_v28, %s1373_s22  ;;  %v1619_v34 = vld [vmem:[#allocation2 + $0x31] sm:$0xff]  ;;  %v1626_v39 = vld [vmem:[#allocation2 + $0x81] sm:$0xff]  ;;  %v335_v44 = vpack.c.bf16 %v364_v21, %v1613_v31  ;;  %1111 = vmatprep.subr.bf16.mxu1 %v1213_v55 }
  0x71   : > { %v357_v35 = vld [vmem:[#allocation2 + $0x72] sm:$0xff]  ;;  %v1630_v41 = vld [vmem:[#allocation2 + $0x61] sm:$0xff]  ;;  %v384_v48 = vpack.c.bf16 %v1619_v34, %v1609_v29  ;;  %v387_v5 = vpack.c.bf16 %v383_v0, %v1626_v39 }
  0x72   : > { %v1623_v37 = vld [vmem:[#allocation2 + $0x71] sm:$0xff]  ;;  %v326_v38 = vpack.c.bf16 %v357_v35, %v1621_v36  ;;  %v358_v45 = vld [vmem:[#allocation2 + $0x82] sm:$0xff]  ;;  %1059 = vmatpush3.bf16.msra.mxu0 %v1214_v60  ;;  %1119 = vmatpush3.bf16.msra.mxu1 %v1214_v60 }
  0x73   : > { %v1628_v40 = vld [vmem:[#allocation2 + $0x32] sm:$0xff]  ;;  %v350_v43 = vpack.c.bf16 %v1626_v39, %v1623_v37  ;;  %416 = vrot.lane.b32.xlu1 %v323_v30, %s1372_s20  ;;  %v1639_v46 = vld [vmem:[#allocation2 + $0x42] sm:$0xff]  ;;  %v1658_v53 = vpack.c.bf16 %v1623_v37, %v1630_v41  ;;  %v362_v56 = vpack.c.bf16 %v358_v45, %v357_v35  ;;  %1060 = vmatprep.subr.bf16.mxu0 %v1215_v61 }
  0x74   : > { %v1633_v42 = vpack.c.bf16 %v1628_v40, %v352_v25  ;;  %v1641_v47 = vld [vmem:[#allocation2 + $0x52] sm:$0xff]  ;;  %546 = vst.msk [vmem:[#allocation3 + $0x40] sm:$0xff] %vm244_vm0, %v326_v38  ;;  %404 = vrot.lane.b32.xlu0 %v311_v33, %s1373_s22  ;;  %v1661_v57 = vld [vmem:[#allocation2 + $0x41] sm:$0xff]  ;;  %1112 = vmatprep.subr.bf16.mxu1 %v1215_v61  ;;  %v360_v9 = vpack.c.bf16 %v1639_v46, %v1628_v40 }
  0x75   : > { %v1649_v49 = vpack.c.bf16 %v1641_v47, %v1639_v46  ;;  %v370_v58 = vld [vmem:[#allocation2 + $0x80] sm:$0xff]  ;;  %v348_v59 = vpack.c.bf16 %v1661_v57, %v1619_v34  ;;  %v333_v63 = vld [vmem:[#allocation2 + $0x70] sm:$0xff]  ;;  %v361_v17 = vpack.c.bf16 %v1621_v36, %v1641_v47 }
  0x76   : > { %540 = vst.msk [vmem:[#allocation3 + $0x10] sm:$0xff] %vm244_vm0, %v1633_v42  ;;  %v375_v62 = vpack.c.bf16 %v371_v54, %v370_v58  ;;  %v338_v2 = vpack.c.bf16 %v370_v58, %v333_v63  ;;  %v395_v4 = vld [vmem:[#allocation2 + $0x92] sm:$0xff]  ;;  %1061 = vmatpush3.bf16.msra.mxu0 %v1216_v1  ;;  %1120 = vmatpush3.bf16.msra.mxu1 %v1216_v1  ;;  %v366_v11 = vld [vmem:[#allocation2 + $0x40] sm:$0xff] }
  0x77   : > { %543 = vst.msk [vmem:[#allocation3 + $0x28] sm:$0xff] %vm244_vm0, %v1649_v49  ;;  %428 = vrot.lane.b32.xlu1 %v335_v44, %s1374_s24  ;;  %v399_v6 = vpack.c.bf16 %v395_v4, %v358_v45  ;;  %1062 = vmatprep.subr.bf16.mxu0 %v1217_v3  ;;  %v1678_v10 = vld [vmem:[#allocation2 + $0x51] sm:$0xff]  ;;  %v336_v15 = vpack.c.bf16 %v366_v11, %v1602_v22  ;;  %v368_v18 = vld [vmem:[#allocation2 + $0x60] sm:$0xff] }
  0x78   : > { %464 = vrot.lane.b32.xlu0 %v384_v48, %s1374_s24  ;;  %1113 = vmatprep.subr.bf16.mxu1 %v1217_v3  ;;  %v367_v12 = vld [vmem:[#allocation2 + $0x50] sm:$0xff]  ;;  %v349_v13 = vpack.c.bf16 %v1630_v41, %v1678_v10  ;;  %v385_v16 = vpack.c.bf16 %v1678_v10, %v1661_v57  ;;  %v374_v19 = vpack.c.bf16 %v333_v63, %v368_v18  ;;  %v291_v21 = vld [vmem:[#allocation2] sm:$0xff] }
  0x79   : > { %549 = vst.msk [vmem:[#allocation3 + $0x58] sm:$0xff] %vm244_vm0, %v399_v6  ;;  %v1685_v14 = vpack.c.bf16 %v367_v12, %v366_v11  ;;  %v337_v20 = vpack.c.bf16 %v368_v18, %v367_v12  ;;  %v299_v25 = vpack.c.bf16 %v1613_v31, %v291_v21 }
  0x7a   : > { %1063 = vmatpush3.bf16.msra.mxu0 %v1218_v7  ;;  %1121 = vmatpush3.bf16.msra.mxu1 %v1218_v7 }
  0x7b   : > { %410 = vrot.lane.b32.xlu1 %v1658_v53, %s1373_s22  ;;  %1094 = vmatprep.subr.bf16.mxu1 %v1673_v8  ;;  %v558_v58 = vld [vmem:[#allocation3 + $0x40] sm:$0xff] }
  0x7c   : > { %446 = vrot.lane.b32.xlu0 %v362_v56, %s1373_s22 }
  0x7d   : > { %v552_v54 = vld [vmem:[#allocation3 + $0x10] sm:$0xff] }
  0x7f   : > { %422 = vrot.lane.b32.xlu1 %v326_v38, %s1372_s20 }
  0x80   : > { %458 = vrot.lane.b32.xlu0 %v375_v62, %s1372_s20  ;;  %v561_v57 = vld [vmem:[#allocation3 + $0x58] sm:$0xff] }
  0x83   : > { %434 = vrot.lane.b32.xlu1 %v338_v2, %s1374_s24 }
  0x84   : > { %470 = vrot.lane.b32.xlu0 %v387_v5, %s1374_s24 }
  0x87   : > { %406 = vrot.lane.b32.xlu1 %v384_v48, %s1373_s22 }
  0x88   : > { %442 = vrot.lane.b32.xlu0 %v360_v9, %s1373_s22 }
  0x8b   : > { %418 = vrot.lane.b32.xlu1 %v1633_v42, %s1372_s20 }
  0x8c   : > { %454 = vrot.lane.b32.xlu0 %v1685_v14, %s1372_s20 }
  0x8f   : > { %430 = vrot.lane.b32.xlu1 %v336_v15, %s1374_s24 }
  0x90   : > { %466 = vrot.lane.b32.xlu0 %v385_v16, %s1374_s24 }
  0x93   : > { %408 = vrot.lane.b32.xlu1 %v385_v16, %s1373_s22 }
  0x94   : > { %444 = vrot.lane.b32.xlu0 %v361_v17, %s1373_s22 }
  0x97   : > { %420 = vrot.lane.b32.xlu1 %v1649_v49, %s1372_s20 }
  0x98   : > { %456 = vrot.lane.b32.xlu0 %v374_v19, %s1372_s20 }
  0x9b   : > { %432 = vrot.lane.b32.xlu1 %v337_v20, %s1374_s24 }
  0x9c   : > { %468 = vrot.lane.b32.xlu0 %v1658_v53, %s1374_s24  ;;  %v1220_v53 = vld [vmem:[#allocation7 + $0x88] sm:$0xff]  }
  0xe1   : > { %v453_v22 = vpop.permute.xlu1 %452 }
  0xe2   : > { %v441_v23 = vpop.permute.xlu0 %440 }
  0xe3   : > { %v508_v30 = vsel %vm244_vm0, %v347_v32, %v441_v23 }
  0xe4   : > { %v519_v40 = vsel %vm484_vm2, %v508_v30, %v453_v22 }
  0xe5   : > { %v417_v27 = vpop.permute.xlu1 %416 }
  0xe6   : > { %v405_v28 = vpop.permute.xlu0 %404 }
  0xe7   : > { %v474_v33 = vsel %vm244_vm0, %v299_v25, %v405_v28  ;;  %v999_v25 = vld [vmem:[%s1822_s2] ss:$0 sm:$0xff] }
  0xe8   : > { %v486_v36 = vsel %vm484_vm2, %v474_v33, %v417_v27 }
  0xe9   : > { %v429_v35 = vpop.permute.xlu1 %428 }
  0xea   : > { %v495_v38 = vsel %vm493_vm3, %v486_v36, %v429_v35  ;;  %v465_v42 = vpop.permute.xlu0 %464 }
  0xeb   : > { %v527_v31 = vsel %vm493_vm3, %v519_v40, %v465_v42 }
  0xec   : > { %758 = vmatprep.mubr.bf16.mxu0 %v527_v31 }
  0xed   : > { %v411_v44 = vpop.permute.xlu1 %410  ;;  %759 = vmatmul.mubr.bf16.vlgmr.msra.gmra.mrb[0].mxu0 %v495_v38 }
  0xee   : > { %v447_v26 = vpop.permute.xlu0 %446  ;;  %v483_v45 = vsel %vm244_vm0, %v374_v19, %v411_v44 }
  0xef   : > { %v517_v46 = vsel %vm244_vm0, %v350_v43, %v447_v26  ;;  %v555_v43 = vld [vmem:[#allocation3 + $0x28] sm:$0xff] }
  0xf1   : > { %v423_v29 = vpop.permute.xlu1 %422 }
  0xf2   : > { %v459_v32 = vpop.permute.xlu0 %458  ;;  %v492_v47 = vsel %vm484_vm2, %v483_v45, %v423_v29 }
  0xf3   : > { %v525_v49 = vsel %vm484_vm2, %v517_v46, %v459_v32 }
  0xf5   : > { %v435_v48 = vpop.permute.xlu1 %434 }
  0xf6   : > { %v504_v50 = vsel %vm493_vm3, %v492_v47, %v435_v48  ;;  %v471_v51 = vpop.permute.xlu0 %470 }
  0xf7   : > { %v536_v52 = vsel %vm493_vm3, %v525_v49, %v471_v51 }
  0xf8   : > { %782 = vmatprep.mubr.bf16.mxu1 %v536_v52 }
  0xf9   : > { %v407_v55 = vpop.permute.xlu1 %406  ;;  %783 = vmatmul.mubr.bf16.vlgmr.msra.gmra.mrb[0].mxu1 %v504_v50 }
  0xfa   : > { %v443_v56 = vpop.permute.xlu0 %442  ;;  %1095 = vmatpush3.bf16.msra.mxu1 %v1673_v8  ;;  %1098 = vmatprep.mubr.msk.bf16.mxu1 %vm244_vm0, %v552_v54  ;;  %v477_v60 = vsel %vm244_vm0, %v1605_v24, %v407_v55 }
  0xfb   : > { %1096 = vmatprep.subr.bf16.mxu1 %v1220_v53  ;;  %v511_v61 = vsel %vm244_vm0, %v348_v59, %v443_v56 }
  0xfd   : > { %v419_v37 = vpop.permute.xlu1 %418 }
  0xfe   : > { %v455_v39 = vpop.permute.xlu0 %454  ;;  %1097 = vmatpush3.bf16.msra.mxu1 %v1220_v53  ;;  %v488_v62 = vsel %vm484_vm2, %v477_v60, %v419_v37 }
  0xff   : > { %v521_v0 = vsel %vm484_vm2, %v511_v61, %v455_v39 }
 0x101   : > { %v431_v63 = vpop.permute.xlu1 %430  ;;  %1099 = vmatmul.mubr.msk.bf16.vlgmr.msra.gmra.mrb[4].mxu1 %vm244_vm0, %v555_v43 }
 0x102   : > { %v498_v1 = vsel %vm493_vm3, %v488_v62, %v431_v63  ;;  %v467_v2 = vpop.permute.xlu0 %466  ;;  %1102 = vmatprep.mubr.msk.bf16.mxu1 %vm244_vm0, %v558_v58 }
 0x103   : > { %v530_v3 = vsel %vm493_vm3, %v521_v0, %v467_v2 }
 0x104   : > { %766 = vmatprep.mubr.bf16.mxu0 %v530_v3 }
 0x105   : > { %v409_v24 = vpop.permute.xlu1 %408  ;;  %767 = vmatmul.mubr.bf16.gmra.mrb[4].mxu0 %v498_v1 }
 0x106   : > { %v445_v34 = vpop.permute.xlu0 %444  ;;  %v480_v5 = vsel %vm244_vm0, %v1685_v14, %v409_v24 }
 0x107   : > { %v514_v6 = vsel %vm244_vm0, %v349_v13, %v445_v34 }
 0x109   : > { %v421_v59 = vpop.permute.xlu1 %420  ;;  %1103 = vmatmul.mubr.msk.bf16.gmra.mrb[8].mxu1 %vm244_vm0, %v561_v57 }
 0x10a   : > { %v457_v4 = vpop.permute.xlu0 %456  ;;  %v490_v7 = vsel %vm484_vm2, %v480_v5, %v421_v59 }
 0x10b   : > { %v523_v9 = vsel %vm484_vm2, %v514_v6, %v457_v4 }
 0x10d   : > { %v433_v8 = vpop.permute.xlu1 %432 }
 0x10e   : > { %v501_v11 = vsel %vm493_vm3, %v490_v7, %v433_v8  ;;  %v469_v12 = vpop.permute.xlu0 %468 }
 0x10f   : > { %v533_v15 = vsel %vm493_vm3, %v523_v9, %v469_v12 }
 0x110   : > { %774 = vmatprep.mubr.bf16.mxu0 %v533_v15 }
 0x111   : > { %775 = vmatmul.mubr.bf16.gmra.mrb[8].mxu0 %v501_v11 }
 0x1c0   : > { %v1064_v16 = vpop.f32.mrb[0].mxu0 }
 0x1c1   : > { %v1065_v14 = vpop.f32.mrb[1].mxu0 }
 0x1c2   : > { %v1066_v17 = vadd.f32 %v1065_v14, %v1064_v16  ;;  %v1067_v18 = vpop.f32.mrb[2].mxu0 }
 0x1c3   : > { %v1068_v41 = vpop.f32.mrb[3].mxu0 }
 0x1c4   : > { %v1069_v10 = vadd.f32 %v1068_v41, %v1067_v18  ;;  %v761_v28 = vadd.f32 %v1066_v17, %v999_v25 }
 0x1c6   : > { %v764_v36 = vadd.f32 %v1069_v10, %v999_v25 }
 0x1cc   : > { %v1082_v13 = vpop.f32.mrb[0].mxu1 }
 0x1cd   : > { %v1083_v19 = vpop.f32.mrb[1].mxu1 }
 0x1ce   : > { %v1084_v20 = vadd.f32 %v1083_v19, %v1082_v13  ;;  %v1085_v21 = vpop.f32.mrb[2].mxu1 }
 0x1cf   : > { %v1086_v22 = vpop.f32.mrb[3].mxu1 }
 0x1d0   : > { %v1087_v23 = vadd.f32 %v1086_v22, %v1085_v21  ;;  %v785_v32 = vadd.f32 %v1084_v20, %v999_v25 }
 0x1d2   : > { %v788_v50 = vadd.f32 %v1087_v23, %v999_v25 }
 0x1d4   : > { %v1100_v27 = vpop.f32.mrb[4].mxu1 }
 0x1d5   : > { %v825_v30 = vpop.f32.mrb[5].mxu1 }
 0x1d6   : > { %v826_v33 = vadd.f32 %v825_v30, %v761_v28  ;;  %v1101_v35 = vpop.f32.mrb[6].mxu1 }
 0x1d7   : > { %v828_v38 = vpop.f32.mrb[7].mxu1 }
 0x1d8   : > { %856 = vst [vmem:[%s1754_s18] sm:$0xff] %v826_v33  ;;  %v829_v40 = vadd.f32 %v828_v38, %v764_v36  ;;  %v1070_v42 = vpop.f32.mrb[4].mxu0 }
 0x1d9   : > { %v1071_v31 = vpop.f32.mrb[5].mxu0 }
 0x1da   : > { %857 = vst [vmem:[%s1754_s18 + $0x8] sm:$0xff] %v829_v40  ;;  %v1072_v44 = vadd.f32 %v1071_v31, %v1070_v42  ;;  %v1073_v26 = vpop.f32.mrb[6].mxu0 }
 0x1db   : > { %v1074_v29 = vpop.f32.mrb[7].mxu0 }
 0x1dc   : > { %v769_v45 = vadd.f32 %v1072_v44, %v999_v25  ;;  %v1075_v46 = vadd.f32 %v1074_v29, %v1073_v26  ;;  %v1104_v47 = vpop.f32.mrb[8].mxu1 }
 0x1dd   : > { %v850_v48 = vadd.f32 %v1104_v47, %v785_v32  ;;  %v841_v49 = vpop.f32.mrb[9].mxu1 }
 0x1de   : > { %v834_v51 = vadd.f32 %v1100_v27, %v769_v45  ;;  %v772_v52 = vadd.f32 %v1075_v46, %v999_v25  ;;  %v1105_v53 = vpop.f32.mrb[10].mxu1 }
 0x1df   : > { %862 = vst [vmem:[%s1754_s18 + $0x30] sm:$0xff] %v850_v48  ;;  %v853_v54 = vadd.f32 %v1105_v53, %v788_v50  ;;  %v844_v55 = vpop.f32.mrb[11].mxu1 }
 0x1e0   : > { %858 = vst [vmem:[%s1754_s18 + $0x10] sm:$0xff] %v834_v51  ;;  %v837_v56 = vadd.f32 %v1101_v35, %v772_v52 }
 0x1e1   : > { %863 = vst [vmem:[%s1754_s18 + $0x38] sm:$0xff] %v853_v54 }
 0x1e2   : > { %859 = vst [vmem:[%s1754_s18 + $0x18] sm:$0xff] %v837_v56 }
 0x1e4   : > { %v1076_v37 = vpop.f32.mrb[8].mxu0 }
 0x1e5   : > { %v1077_v39 = vpop.f32.mrb[9].mxu0 }
 0x1e6   : > { %v1078_v43 = vadd.f32 %v1077_v39, %v1076_v37  ;;  %v1079_v58 = vpop.f32.mrb[10].mxu0 }
 0x1e7   : > { %v1080_v60 = vpop.f32.mrb[11].mxu0 }
 0x1e8   : > { %v777_v61 = vadd.f32 %v1078_v43, %v999_v25  ;;  %v1081_v62 = vadd.f32 %v1080_v60, %v1079_v58 }
 0x1ea   : > { %v842_v63 = vadd.f32 %v841_v49, %v777_v61  ;;  %v780_v0 = vadd.f32 %v1081_v62, %v999_v25 }
 0x1ec   : > { %860 = vst [vmem:[%s1754_s18 + $0x20] sm:$0xff] %v842_v63  ;;  %v845_v1 = vadd.f32 %v844_v55, %v780_v0 }
 0x1ee   : > { %861 = vst [vmem:[%s1754_s18 + $0x28] sm:$0xff] %v845_v1 }
 0x1ef   : > { %1292 = shalt.err (!%p1289_p5)
}
 0x1f0   : > { %s1293_s20 = scalar_lea.hbm %s1769_s4, 1024  ;;  %s1297_s10 = scalar_lea.hbm %s1823_s3, 2048 }
 0x1f1   : > { %p1294_p9 = scmp.ne.s32.totalorder %s1769_s4, %s1293_s20  ;;  %p1298_p3 = scmp.lt.u32.totalorder %s1769_s4, %s1823_s3 }
 0x1f2   : > { %p1299_p7 = scmp.lt.u32.totalorder %s1297_s10, %s1293_s20  ;;  %p1301_p4 = scmp.lt.u32.totalorder %s1293_s20, %s1769_s4 }
 0x1f3   : > { %p1295_p1 = pnand %p1294_p9, %p1497_p10 }
 0x1f4   : > { %p1300_p13 = por %p1299_p7, %p1298_p3 }
 0x1f5   : > { %p1296_p2 = pneg %p1295_p1 }
 0x1f6   : > { %p1302_p6 = por %p1301_p4, %p1300_p13 }
 0x1f8   : > { %p1303_p8 = pnand %p1302_p6, %p1296_p2 }
 0x1fa   : > { %1306 = shalt.err (!%p1303_p8)
}
 0x1fb   : > { %s1376_s18 = smov 128   ;;  %s1377_s25 = smov 8  }
 0x1fc   : > { %1128 = dma.vmem_to_hbm [thread:$0]  (%p1497_p10), %s1764_s19, 1024, %s1769_s4, %s865_s6, %s1376_s18, %s1376_s18, %s1377_s25  }
 0x1fd PF: > { %s894_s26 = sand.u32 1, %s1345_s12   ;;  %p1841_p12 = scmp.ne.s32.totalorder %s1831_s23, 0 }
 0x1fe   : > { %p1842_p11 = scmp.ge.s32.totalorder %s1365_s17, 2  ;;  %s895_s21 = scalar_lea.sflag [#allocation6], %s894_s26 }
 0x200   : > { %p1139_p0 = pnand %p1842_p11, %p1841_p12 }
 0x202   : > { %1340 = dma.done.wait (!%p1139_p0), %s895_s21, 1024  }
 0x203   : > { %1342 = vsyncadd (!%p1139_p0), %s895_s21, 4294966272  ;;  %s20_s17 = sadd.s32 1, %s1365_s17   ;;  %s1843_s12 = smov %s1349_s13 }
 0x204   : > { %p17_p5 = scmp.ge.s32.totalorder %s20_s17, 4   ;;  %s1844_s13 = smov %s1353_s14 }
 0x205   : > { %s1845_s14 = smov %s1506_s5  ;;  %s1846_s15 = smov %s1361_s16 }
 0x206   : > { %s1847_s16 = smov %s1849_s28  ;;  %19 = sbr.rel (!%p17_p5) target bundleno = 7 (0x7), region = 91 }
 0x20d   :  { %900 = vsyncpa [#allocation5], 1 }
 0x20e   :  { %902 = vsyncpa [#allocation5 + $0x1], 1 }
 0x20f   :  { %903 = vsyncpa [#allocation8], 1 }
 0x210   :  { %904 = vsyncpa [#allocation6], 1 }
 0x211   :  { %906 = vsyncpa [#allocation6 + $0x1], 1 }

</bundles_post_ra>
